<compile_context>
chip_gen: v7x
topology: tpu7x:2x2x1
jax: 0.10.0
libtpu: 0.0.40
codegen_flags: <defaults>
</compile_context>

<pallas_src>
import functools

import jax
import jax.numpy as jnp
from jax import lax
from jax.experimental import pallas as pl
from jax.experimental.pallas import tpu as pltpu

_LANE = 128


def _masked(x, k, tk, d_valid):
    """Zero out columns >= d_valid of the current (rows, tk) D-slab."""
    col = lax.broadcasted_iota(jnp.int32, x.shape, 1) + k * tk
    return jnp.where(col < d_valid, x, jnp.zeros_like(x))


def _fused_kernel(n, d_valid, tk, mask_last,
                  a_ref, e_ref, out_ref, ae_buf, acc_ref):
    """Single-matmul path (2N <= 128): one (2N, 2N) Gram accumulator."""
    k = pl.program_id(0)

    @pl.when(k == 0)
    def _init():
        acc_ref[...] = jnp.zeros_like(acc_ref)

    a = a_ref[...]
    e = e_ref[...]
    if mask_last:  # static flag: only emitted when D % tk != 0
        a = _masked(a, k, tk, d_valid)
        e = _masked(e, k, tk, d_valid)

    # Stack the A and E slabs so one MXU matmul computes both Gram blocks
    # (RHS weight loads are shared between the two products).
    ae_buf[pl.ds(0, n), :] = a
    ae_buf[pl.ds(n, n), :] = e
    ae = ae_buf[...]
    dn = (((1,), (1,)), ((), ()))  # contract dim 1 of both operands (X @ X.T)
    acc_ref[...] += lax.dot_general(ae, ae, dn,
                                    preferred_element_type=jnp.float32)

    @pl.when(k == pl.num_programs(0) - 1)
    def _finalize():
        g = acc_ref[...]
        sim = g[:n, :n]
        esim = g[n:, n:]
        # Row-wise L2 normalization via rsqrt-multiply (EUP).  Zero rows ->
        # NaN, same as the PyTorch reference.
        sim = sim * lax.rsqrt(jnp.sum(sim * sim, axis=1, keepdims=True))
        esim = esim * lax.rsqrt(jnp.sum(esim * esim, axis=1, keepdims=True))
        diff = sim - esim
        out_ref[0, 0] = jnp.sum(diff * diff) / jnp.float32(n)


def _split_kernel(n, d_valid, tk, mask_last,
                  a_ref, e_ref, out_ref, sim_acc, ema_acc):
    """Two-matmul path (2N > 128): separate (N, N) Gram accumulators."""
    k = pl.program_id(0)

    @pl.when(k == 0)
    def _init():
        sim_acc[...] = jnp.zeros_like(sim_acc)
        ema_acc[...] = jnp.zeros_like(ema_acc)

    a = a_ref[...]
    e = e_ref[...]
    if mask_last:
        a = _masked(a, k, tk, d_valid)
        e = _masked(e, k, tk, d_valid)

    dn = (((1,), (1,)), ((), ()))
    sim_acc[...] += lax.dot_general(a, a, dn,
                                    preferred_element_type=jnp.float32)
    ema_acc[...] += lax.dot_general(e, e, dn,
                                    preferred_element_type=jnp.float32)

    @pl.when(k == pl.num_programs(0) - 1)
    def _finalize():
        sim = sim_acc[...]
        esim = ema_acc[...]
        sim = sim * lax.rsqrt(jnp.sum(sim * sim, axis=1, keepdims=True))
        esim = esim * lax.rsqrt(jnp.sum(esim * esim, axis=1, keepdims=True))
        diff = sim - esim
        out_ref[0, 0] = jnp.sum(diff * diff) / jnp.float32(n)


def batch_loss(activations, ema_activations, batch_size, world_size=1,
               tk_cap=2048, vmem_input_budget=8 << 20):
    """Pallas implementation of BatchLoss.forward (single-device case).

    activations / ema_activations: NCHW tensors with N == batch_size * world_size.
    tk_cap: max lane-width of the D reduction tile (multiple of 128).
    vmem_input_budget: soft cap on VMEM bytes used by streamed input tiles.
    """
    assert activations.shape == ema_activations.shape
    assert world_size == 1, "distributed all-gather not modeled in this kernel"
    n = batch_size * world_size

    # Glue: flatten to (N, D) in plain JAX (matches .view(N, -1)).
    a2d = activations.reshape(n, -1)
    e2d = ema_activations.reshape(n, -1)
    d = a2d.shape[1]
    itemsize = jnp.dtype(a2d.dtype).itemsize

    # Tiny feature dim: zero-pad up to one lane tile (safe: zero columns do not
    # change A @ A.T).  For D >= 128 no padding copies are made.
    if d < _LANE:
        pad = ((0, 0), (0, _LANE - d))
        a2d = jnp.pad(a2d, pad)
        e2d = jnp.pad(e2d, pad)
        d = _LANE

    # Reduction tile tk: a multiple of 128 lanes, sized to the VMEM budget
    # (2 inputs x 2 pipeline buffers + stacked scratch ~ 6 * n * tk * itemsize).
    budget_cols = max(_LANE, vmem_input_budget // (6 * n * itemsize))
    tk_cap_eff = max(_LANE, min(tk_cap, (budget_cols // _LANE) * _LANE))
    tk = min(tk_cap_eff, (d // _LANE) * _LANE)
    num_k = -(-d // tk)
    mask_last = (d % tk) != 0  # last block is partial -> mask garbage columns

    fuse = (2 * n) <= _LANE
    if fuse:
        kernel = functools.partial(_fused_kernel, n, d, tk, mask_last)
        scratch = [pltpu.VMEM((2 * n, tk), a2d.dtype),
                   pltpu.VMEM((2 * n, 2 * n), jnp.float32)]
    else:
        kernel = functools.partial(_split_kernel, n, d, tk, mask_last)
        scratch = [pltpu.VMEM((n, n), jnp.float32),
                   pltpu.VMEM((n, n), jnp.float32)]

    out = pl.pallas_call(
        kernel,
        out_shape=jax.ShapeDtypeStruct((1, 1), jnp.float32),
        grid_spec=pltpu.PrefetchScalarGridSpec(
            num_scalar_prefetch=0,
            grid=(num_k,),
            in_specs=[
                pl.BlockSpec((n, tk), lambda k: (0, k)),
                pl.BlockSpec((n, tk), lambda k: (0, k)),
            ],
            out_specs=pl.BlockSpec(memory_space=pltpu.SMEM),
            scratch_shapes=scratch,
        ),
        compiler_params=pltpu.CompilerParams(
            dimension_semantics=("arbitrary",),  # D is a reduction axis
        ),
    )(a2d, e2d)
    return out[0, 0]


def batch_loss_ref(activations, ema_activations, batch_size, world_size=1):
    """Pure-JAX reference mirroring the PyTorch forward."""
    n = batch_size * world_size
    a = activations.reshape(n, -1).astype(jnp.float32)
    e = ema_activations.reshape(n, -1).astype(jnp.float32)
    sim = a @ a.T
    sim = sim / jnp.linalg.norm(sim, axis=1, keepdims=True)
    esim = e @ e.T
    esim = esim / jnp.linalg.norm(esim, axis=1, keepdims=True)
    return jnp.sum((sim - esim) ** 2) / n


if __name__ == "__main__":
    key = jax.random.PRNGKey(0)

    cases = [
        (8, (16, 16, 16)),   # D=4096: 2-step fused reduction, aligned tiles
        (8, (3, 10, 10)),    # D=300 : partial last block -> in-kernel mask
        (8, (3, 5, 5)),      # D=75  : < 128 -> zero-pad to one lane tile
        (128, (4, 8, 8)),    # N=128 : 2N > 128 -> split (two-Gram) path
    ]
    for idx, (bs, chw) in enumerate(cases):
        key, k1, k2 = jax.random.split(key, 3)
        act = jax.random.normal(k1, (bs,) + chw, dtype=jnp.float32)
        ema = jax.random.normal(k2, (bs,) + chw, dtype=jnp.float32)
        got = jax.block_until_ready(batch_loss(act, ema, bs, 1))
        want = batch_loss_ref(act, ema, bs, 1)
        assert jnp.allclose(got, want, rtol=1e-4, atol=1e-5), (idx, got, want)

    print("KERNEL_OK")
</pallas_src>

<mosaic_0001>
module attributes {stable_mosaic.version = 11 : i64} {
  func.func @_fused_kernel(%arg0: i32, %arg1: memref<8x2048xf32, #tpu.memory_space<vmem>>, %arg2: memref<8x2048xf32, #tpu.memory_space<vmem>>, %arg3: memref<1x1xf32, #tpu.memory_space<smem>>, %arg4: memref<16x2048xf32, #tpu.memory_space<vmem>>, %arg5: memref<16x16xf32, #tpu.memory_space<vmem>>) attributes {dimension_semantics = [#tpu.dimension_semantics<arbitrary>], iteration_bounds = array<i64: 2>, scalar_prefetch = 0 : i64, scratch_operands = 2 : i64, tpu.core_type = #tpu.core_type<tc>, window_params = [{transform_indices = @transform_0, window_bounds = array<i64: 8, 2048>}, {transform_indices = @transform_1, window_bounds = array<i64: 8, 2048>}, {transform_indices = @transform_2, window_bounds = array<i64: 1, 1>}]} {
    %c0_i32 = arith.constant 0 : i32
    %0 = arith.cmpi eq, %arg0, %c0_i32 : i32
    %1 = arith.extui %0 : i1 to i32
    %c0_i32_0 = arith.constant 0 : i32
    %2 = arith.cmpi ne, %1, %c0_i32_0 : i32
    scf.if %2 {
      %cst_14 = arith.constant 0.000000e+00 : f32
      %15 = vector.broadcast %cst_14 : f32 to vector<16x16xf32>
      %c0_15 = arith.constant 0 : index
      %c0_16 = arith.constant 0 : index
      %16 = vector.load %arg5[%c0_15, %c0_16] : memref<16x16xf32, #tpu.memory_space<vmem>>, vector<16x16xf32>
      tpu.vector_store %arg5[%c0_15, %c0_16], %15 {strides = array<i32>} : memref<16x16xf32, #tpu.memory_space<vmem>>, vector<16x16xf32>,
    } else {
    }
    %c0 = arith.constant 0 : index
    %c0_1 = arith.constant 0 : index
    %3 = vector.load %arg1[%c0, %c0_1] : memref<8x2048xf32, #tpu.memory_space<vmem>>, vector<8x2048xf32>
    %c0_2 = arith.constant 0 : index
    %c0_3 = arith.constant 0 : index
    %4 = vector.load %arg2[%c0_2, %c0_3] : memref<8x2048xf32, #tpu.memory_space<vmem>>, vector<8x2048xf32>
    %c0_4 = arith.constant 0 : index
    %c0_5 = arith.constant 0 : index
    %5 = vector.load %arg4[%c0_4, %c0_5] : memref<16x2048xf32, #tpu.memory_space<vmem>>, vector<8x2048xf32>
    tpu.vector_store %arg4[%c0_4, %c0_5], %3 {strides = array<i32>} : memref<16x2048xf32, #tpu.memory_space<vmem>>, vector<8x2048xf32>,
    %c8 = arith.constant 8 : index
    %c0_6 = arith.constant 0 : index
    %6 = vector.load %arg4[%c8, %c0_6] : memref<16x2048xf32, #tpu.memory_space<vmem>>, vector<8x2048xf32>
    tpu.vector_store %arg4[%c8, %c0_6], %4 {strides = array<i32>} : memref<16x2048xf32, #tpu.memory_space<vmem>>, vector<8x2048xf32>,
    %c0_7 = arith.constant 0 : index
    %c0_8 = arith.constant 0 : index
    %7 = vector.load %arg4[%c0_7, %c0_8] : memref<16x2048xf32, #tpu.memory_space<vmem>>, vector<16x2048xf32>
    %c0_9 = arith.constant 0 : index
    %c0_10 = arith.constant 0 : index
    %8 = vector.load %arg5[%c0_9, %c0_10] : memref<16x16xf32, #tpu.memory_space<vmem>>, vector<16x16xf32>
    %cst = arith.constant dense<0.000000e+00> : vector<16x16xf32>
    %9 = tpu.matmul %7, %7, %cst {dimension_numbers = #tpu.dot_dimension_numbers<[1], [1], [0], [0], [0, 0, 1, 0], [], []>} : vector<16x2048xf32>, vector<16x2048xf32>, vector<16x16xf32> -> vector<16x16xf32>
    %10 = arith.addf %8, %9 : vector<16x16xf32>
    %c0_11 = arith.constant 0 : index
    %c0_12 = arith.constant 0 : index
    %11 = vector.load %arg5[%c0_11, %c0_12] : memref<16x16xf32, #tpu.memory_space<vmem>>, vector<16x16xf32>
    tpu.vector_store %arg5[%c0_11, %c0_12], %10 {strides = array<i32>} : memref<16x16xf32, #tpu.memory_space<vmem>>, vector<16x16xf32>,
    %c1_i32 = arith.constant 1 : i32
    %12 = arith.cmpi eq, %arg0, %c1_i32 : i32
    %13 = arith.extui %12 : i1 to i32
    %c0_i32_13 = arith.constant 0 : i32
    %14 = arith.cmpi ne, %13, %c0_i32_13 : i32
    scf.if %14 {
      %c0_14 = arith.constant 0 : index
      %c0_15 = arith.constant 0 : index
      %15 = vector.load %arg5[%c0_14, %c0_15] : memref<16x16xf32, #tpu.memory_space<vmem>>, vector<16x16xf32>
      %16 = vector.extract_strided_slice %15 {offsets = [0, 0], sizes = [8, 8], strides = [1, 1]} : vector<16x16xf32> to vector<8x8xf32>
      %17 = vector.extract_strided_slice %15 {offsets = [8, 8], sizes = [8, 8], strides = [1, 1]} : vector<16x16xf32> to vector<8x8xf32>
      %18 = arith.mulf %16, %16 : vector<8x8xf32>
      %cst_16 = arith.constant dense<0.000000e+00> : vector<8xf32>
      %19 = vector.multi_reduction <add>, %18, %cst_16 [1] : vector<8x8xf32> to vector<8xf32>
      %20 = vector.shape_cast %19 : vector<8xf32> to vector<8x1xf32>
      %21 = math.rsqrt %20 : vector<8x1xf32>
      %22 = vector.broadcast %21 : vector<8x1xf32> to vector<8x8xf32>
      %23 = arith.mulf %16, %22 : vector<8x8xf32>
      %24 = arith.mulf %17, %17 : vector<8x8xf32>
      %cst_17 = arith.constant dense<0.000000e+00> : vector<8xf32>
      %25 = vector.multi_reduction <add>, %24, %cst_17 [1] : vector<8x8xf32> to vector<8xf32>
      %26 = vector.shape_cast %25 : vector<8xf32> to vector<8x1xf32>
      %27 = math.rsqrt %26 : vector<8x1xf32>
      %28 = vector.broadcast %27 : vector<8x1xf32> to vector<8x8xf32>
      %29 = arith.mulf %17, %28 : vector<8x8xf32>
      %30 = arith.subf %23, %29 : vector<8x8xf32>
      %31 = arith.mulf %30, %30 : vector<8x8xf32>
      %32 = vector.shape_cast %31 : vector<8x8xf32> to vector<1x8x8xf32>
      %cst_18 = arith.constant dense<0.000000e+00> : vector<1xf32>
      %33 = vector.multi_reduction <add>, %32, %cst_18 [1, 2] : vector<1x8x8xf32> to vector<1xf32>
      %34 = vector.shape_cast %33 : vector<1xf32> to vector<1x1x1xf32>
      %35 = vector.extract %34[0, 0, 0] : f32 from vector<1x1x1xf32>
      %cst_19 = arith.constant 8.000000e+00 : f32
      %36 = arith.divf %35, %cst_19 : f32
      %c0_20 = arith.constant 0 : index
      %c0_21 = arith.constant 0 : index
      %37 = memref.load %arg3[%c0_20, %c0_21] : memref<1x1xf32, #tpu.memory_space<smem>>
      memref.store %36, %arg3[%c0_20, %c0_21] : memref<1x1xf32, #tpu.memory_space<smem>>
    } else {
    }
    return
  }
  func.func @transform_0(%arg0: i32) -> (i32, i32) {
    %c0_i32 = arith.constant 0 : i32
    %c0_i32_0 = arith.constant 0 : i32
    return %c0_i32, %arg0 : i32, i32
  }
  func.func @transform_1(%arg0: i32) -> (i32, i32) {
    %c0_i32 = arith.constant 0 : i32
    %c0_i32_0 = arith.constant 0 : i32
    return %c0_i32, %arg0 : i32, i32
  }
  func.func @transform_2(%arg0: i32) -> (i32, i32) {
    %c0_i32 = arith.constant 0 : i32
    %c0_i32_0 = arith.constant 0 : i32
    %c0_i32_1 = arith.constant 0 : i32
    return %c0_i32, %c0_i32_0 : i32, i32
  }
}

</mosaic_0001>

<bundles_post_ra>
// kernel: tpu_custom_call.1
= control target key start
LH: loop header
LB: loop body
LE: loop exit
PB: predicated region body
PF: predicated region fallthrough
CT: control target
= control target key end

     0   :  { %7 = vsyncpa [#allocation5], 0  ;;  %s1471_s0 = inlined_call_operand.hbm [shape: f32[8,4096], index: 0, kind: input, shape index: {}]   ;;  %s1472_s1 = inlined_call_operand.hbm [shape: f32[8,4096], index: 1, kind: input, shape index: {}]   ;;  %s1473_s2 = inlined_call_operand.hbm [shape: f32[1,1], index: 2, kind: output, shape index: {}]  }
   0x1   :  { %9 = vsyncpa [#allocation5 + $0x1], 0 }
   0x2   :  { %10 = vsyncpa [#allocation8], 0 }
   0x3   :  { %12 = vsyncpa [#allocation8 + $0x1], 0 }
   0x4   :  { %13 = vsyncpa [#allocation6], 0  ;;  %s1268_s9 = smov 0   ;;  %s1270_s10 = smov 0  }
   0x5   :  { %s1272_s11 = smov 0   ;;  %s1274_s12 = smov 0  }
   0x6 LB: > { %s1287_s13 = sadd.s32 4294967295, %s1246_s12   ;;  %s1290_s14 = sadd.s32 1, %s1246_s12   ;;  %s1246_s12 = sphi %s1274_s12, %s1485_s12   ;;  %s1242_s11 = sphi %s1272_s11, %s1484_s11   ;;  %s1238_s10 = sphi %s1270_s10, %s1483_s10   ;;  %s1234_s9 = sphi %s1268_s9, %s1482_s9  }
   0x7   : > { %s23_s15 = ssub.s32 %s1246_s12, %s1290_s14  ;;  %s26_s16 = sadd.s32 1, %s1242_s11 }
   0x8   : > { %p24_p0 = scmp.eq.s32.totalorder %s23_s15, 0  ;;  %p33_p1 = scmp.ne.s32.totalorder %s1242_s11, %s1238_s10 }
   0x9   : > { %p34_p2 = scmp.eq.s32.totalorder %s1246_s12, 0  ;;  %p39_p3 = scmp.ne.s32.totalorder %s1238_s10, %s1234_s9 }
   0xa   : > { %s1300_s17 = scalar_select %p24_p0, %s1242_s11, %s26_s16  }
   0xb   : > { %p35_p4 = por %p34_p2, %p33_p1  ;;  %p40_p5 = scmp.eq.s32.totalorder %s1287_s13, 0 }
   0xc   : > { %p1090_p6 = scmp.lt.s32.totalorder %s1246_s12, 2  ;;  %s1309_s19 = sand.u32 1, %s1242_s11  }
   0xd   : > { %p1304_p7 = por %p40_p5, %p39_p3  ;;  %s1024_s20 = sshll.u32 %s1309_s19, 7 }
   0xe   : > { %s1039_s21 = sshll.u32 %s1246_s12, 11  ;;  %s114_s25 = scalar_lea.vmem [#allocation4], %s1024_s20 }
   0xf   : > { %s1475_s18 = scalar_select %p1304_p7, 1, 0 }
  0x10   : > { %s1318_s24 = scalar_lea.hbm %s1471_s0, %s1039_s21  ;;  %s122_s26 = sshll.u32 %s114_s25, 4  ;;  %s1322_s26 = int_to_ptr.vmem [resolvable:$true] %s122_s26 }
  0x11   : > { %p1324_p8 = pnand %p1090_p6, %p35_p4  ;;  %s111_s28 = scalar_lea.sflag [#allocation5], %s1309_s19 }
  0x12   : > { %s1132_s29 = scalar_lea.hbm %s1318_s24, 2048  ;;  %s1137_s4 = scalar_lea.hbm %s1471_s0, 4096 }
  0x13   : > { %p1133_p11 = scmp.ne.s32.totalorder %s1318_s24, %s1132_s29  ;;  %p1134_p12 = pneg %p1324_p8 }
  0x14   : > { %p1138_p1 = scmp.lt.u32.totalorder %s1318_s24, %s1471_s0  ;;  %p1139_p2 = scmp.lt.u32.totalorder %s1137_s4, %s1132_s29 }
  0x15   : > { %p1135_p13 = pnand %p1134_p12, %p1133_p11  ;;  %p1141_p4 = scmp.lt.u32.totalorder %s1132_s29, %s1318_s24 }
  0x16   : > { %p1140_p3 = por %p1139_p2, %p1138_p1 }
  0x17   : > { %p1136_p0 = pneg %p1135_p13 }
  0x18   : > { %p1142_p5 = por %p1141_p4, %p1140_p3 }
  0x1a   : > { %p1143_p6 = pnand %p1142_p5, %p1136_p0 }
  0x1c   : > { %1146 = shalt.err (!%p1143_p6)
}
  0x1d   : > { %s1147_s7 = scalar_lea.vmem %s1322_s26, 2048  ;;  %s1248_s8 = smov [#allocation4]  }
  0x1e   : > { %p1148_p11 = scmp.ne.s32.totalorder %s1322_s26, %s1147_s7  ;;  %s1152_s9 = sshll.u32 %s1248_s8, 4  ;;  %s1153_s9 = int_to_ptr.vmem [resolvable:$false] %s1152_s9 }
  0x1f   : > { %s1154_s15 = scalar_lea.vmem %s1153_s9, 4096  ;;  %p1155_p10 = scmp.lt.s32.totalorder %s1322_s26, %s1153_s9 }
  0x20   : > { %p1150_p13 = pnand %p1148_p11, %p1134_p12  ;;  %p1156_p1 = scmp.lt.s32.totalorder %s1154_s15, %s1147_s7 }
  0x22   : > { %p1151_p9 = pneg %p1150_p13  ;;  %p1157_p2 = por %p1156_p1, %p1155_p10 }
  0x24   : > { %p1158_p3 = pnand %p1157_p2, %p1151_p9 }
  0x26   : > { %1161 = shalt.err (!%p1158_p3)
}
  0x27   : > { %1086 = dma.hbm_to_vmem [thread:$0]  (!%p1324_p8), %s1318_s24, 2048, %s1322_s26, %s111_s28  }
  0x28   : > { %p1477_p0 = scmp.lt.s32.totalorder %s1246_s12, 3  ;;  %p1478_p4 = scmp.ge.s32.totalorder %s1246_s12, 1 }
  0x29   : > { %s1369_s25 = scalar_lea.hbm %s1472_s1, %s1039_s21  ;;  %s133_s29 = scalar_lea.vmem [#allocation7], %s1024_s20 }
  0x2a   : > { %p1360_p5 = pnand %p1478_p4, %p1477_p0  ;;  %s141_s30 = sshll.u32 %s133_s29, 4  ;;  %s142_s30 = int_to_ptr.vmem [resolvable:$true] %s141_s30 }
  0x2b   : > { %s130_s24 = scalar_lea.sflag [#allocation8], %s1309_s19  ;;  %s1162_s26 = scalar_lea.hbm %s1369_s25, 2048 }
  0x2c   : > { %s1479_s16 = scalar_select %p1360_p5, 1, 0 }
  0x2d   : > { %p1163_p9 = scmp.ne.s32.totalorder %s1369_s25, %s1162_s26  ;;  %s1167_s21 = scalar_lea.hbm %s1472_s1, 4096 }
  0x2e   : > { %p1168_p11 = scmp.lt.u32.totalorder %s1369_s25, %s1472_s1  ;;  %p1169_p13 = scmp.lt.u32.totalorder %s1167_s21, %s1162_s26 }
  0x2f   : > { %p1165_p10 = pnand %p1163_p9, %p1134_p12  ;;  %p1171_p2 = scmp.lt.u32.totalorder %s1162_s26, %s1369_s25 }
  0x30   : > { %p1170_p1 = por %p1169_p13, %p1168_p11 }
  0x31   : > { %p1166_p6 = pneg %p1165_p10 }
  0x32   : > { %p1172_p3 = por %p1171_p2, %p1170_p1 }
  0x34   : > { %p1173_p0 = pnand %p1172_p3, %p1166_p6 }
  0x36   : > { %1176 = shalt.err (!%p1173_p0)
}
  0x37   : > { %s1177_s19 = scalar_lea.vmem %s142_s30, 2048  ;;  %s1249_s20 = smov [#allocation7]  }
  0x38   : > { %p1178_p4 = scmp.ne.s32.totalorder %s142_s30, %s1177_s19  ;;  %s1182_s5 = sshll.u32 %s1249_s20, 4  ;;  %s1183_s5 = int_to_ptr.vmem [resolvable:$false] %s1182_s5 }
  0x39   : > { %s1184_s6 = scalar_lea.vmem %s1183_s5, 4096  ;;  %p1185_p7 = scmp.lt.s32.totalorder %s142_s30, %s1183_s5 }
  0x3a   : > { %p1180_p9 = pnand %p1178_p4, %p1134_p12  ;;  %p1186_p5 = scmp.lt.s32.totalorder %s1184_s6, %s1177_s19 }
  0x3c   : > { %p1181_p10 = pneg %p1180_p9  ;;  %p1187_p11 = por %p1186_p5, %p1185_p7 }
  0x3e   : > { %p1188_p13 = pnand %p1187_p11, %p1181_p10 }
  0x40   : > { %1191 = shalt.err (!%p1188_p13)
}
  0x41   : > { %1089 = dma.hbm_to_vmem [thread:$0]  (!%p1324_p8), %s1369_s25, 2048, %s142_s30, %s130_s24  }
  0x42   : > { %p1480_p6 = scmp.ne.s32.totalorder %s1479_s16, 0 }
  0x43   : > { %s152_s7 = sand.u32 (!%p1480_p6), 1, %s1238_s10   ;;  %p1481_p12 = scmp.ne.s32.totalorder (!%p1480_p6), %s1475_s18, 0 }
  0x44   : > { %150 = sbr.rel (%p1480_p6) target bundleno = 968 (0x3c8), region = 28  ;;  %s1031_s8 = sshll.u32 (!%p1480_p6), %s152_s7, 7 }
  0x45   : > { %s153_s9 = scalar_lea.sflag (!%p1480_p6), [#allocation5], %s152_s7  ;;  %s1396_s15 = scalar_lea.vmem (!%p1480_p6), [#allocation4], %s1031_s8 }
  0x4b   : > { %1221 = dma.done.wait (%p1481_p12), %s153_s9, 2048  }
  0x4c   : > { %1223 = vsyncadd (%p1481_p12), %s153_s9, 4294965248  ;;  %s162_s22 = scalar_lea.sflag [#allocation8], %s152_s7  ;;  %s1402_s27 = scalar_lea.vmem [#allocation7], %s1031_s8 }
  0x4d   : > { %1225 = dma.done.wait (%p1481_p12), %s162_s22, 2048  }
  0x4e   : > { %1227 = vsyncadd (%p1481_p12), %s162_s22, 4294965248  ;;  %p1033_p7 = scmp.ne.s32.totalorder %s1287_s13, 0 }
  0x4f   : > { %vm192_vm0 = vcmask (!%p1033_p7), 130048   ;;  %v1250_v0 = vmov (!%p1033_p7), 0.0  }
  0x50   : > { %191 = sbr.rel (%p1033_p7) target bundleno = 87 (0x57), region = 40  ;;  %193 = vst.msk [vmem:[#allocation3] sm:$0xff] (!%p1033_p7), %vm192_vm0, %v1250_v0  ;;  %194 = vst.msk [vmem:[#allocation3 + $0x8] sm:$0xff] (!%p1033_p7), %vm192_vm0, %v1250_v0 }
  0x57 PF: > { %v196_v1 = vld [vmem:[%s1396_s15 + $0x8] sm:$0xff]  ;;  %v195_v3 = vld [vmem:[%s1396_s15] sm:$0xff]  ;;  %v198_v6 = vld [vmem:[%s1396_s15 + $0x18] sm:$0xff]  ;;  %vm895_vm1 = vcmask 130048   ;;  %p1034_p8 = scmp.ne.s32.totalorder %s1287_s13, 1 }
  0x58   : > { %v212_v2 = vld [vmem:[%s1402_s27 + $0x8] sm:$0xff]  ;;  %v211_v5 = vld [vmem:[%s1402_s27] sm:$0xff]  ;;  %v214_v7 = vld [vmem:[%s1402_s27 + $0x18] sm:$0xff]  ;;  %357 = vmatprep.mubr.f32.mxu0 %v196_v1  ;;  %432 = vmatprep.mubr.f32.mxu1 %v198_v6  ;;  %vm905_vm2 = vcmask (!%p1034_p8), 64512   ;;  %s1251_s18 = smov (!%p1034_p8), 120  }
  0x59   : > { %v1041_v4 = vpack.c.bf16 %v212_v2, %v196_v1  ;;  %v1043_v8 = vpack.c.bf16 %v211_v5, %v195_v3  ;;  %v1045_v9 = vpack.c.bf16 %v214_v7, %v198_v6  ;;  %v197_v10 = vld [vmem:[%s1396_s15 + $0x10] sm:$0xff]  ;;  %v200_v12 = vld [vmem:[%s1396_s15 + $0x28] sm:$0xff]  ;;  %v202_v16 = vld [vmem:[%s1396_s15 + $0x38] sm:$0xff] }
  0x5a   : > { %v213_v11 = vld [vmem:[%s1402_s27 + $0x10] sm:$0xff]  ;;  %v216_v14 = vld [vmem:[%s1402_s27 + $0x28] sm:$0xff]  ;;  %v218_v17 = vld [vmem:[%s1402_s27 + $0x38] sm:$0xff] }
  0x5b   : > { %1042 = vmatprep.subr.bf16.mxu0 %v1041_v4  ;;  %v1047_v13 = vpack.c.bf16 %v213_v11, %v197_v10  ;;  %1046 = vmatprep.subr.bf16.mxu1 %v1045_v9  ;;  %v1049_v15 = vpack.c.bf16 %v216_v14, %v200_v12  ;;  %v199_v18 = vld [vmem:[%s1396_s15 + $0x20] sm:$0xff]  ;;  %v1053_v20 = vpack.c.bf16 %v218_v17, %v202_v16  ;;  %v201_v21 = vld [vmem:[%s1396_s15 + $0x30] sm:$0xff]  ;;  %v204_v23 = vld [vmem:[%s1396_s15 + $0x48] sm:$0xff] }
  0x5c   : > { %1044 = vmatpush1.bf16.xpose.msra.mxu0 %v1043_v8  ;;  %v215_v19 = vld [vmem:[%s1402_s27 + $0x20] sm:$0xff]  ;;  %v217_v22 = vld [vmem:[%s1402_s27 + $0x30] sm:$0xff]  ;;  %v220_v24 = vld [vmem:[%s1402_s27 + $0x48] sm:$0xff] }
  0x5d   : > { %1048 = vmatpush1.bf16.xpose.msra.mxu1 %v1047_v13  ;;  %1050 = vmatprep.subr.bf16.mxu0 %v1049_v15  ;;  %v1051_v25 = vpack.c.bf16 %v215_v19, %v199_v18  ;;  %v206_v26 = vld [vmem:[%s1396_s15 + $0x58] sm:$0xff]  ;;  %v1055_v28 = vpack.c.bf16 %v217_v22, %v201_v21  ;;  %v1057_v29 = vpack.c.bf16 %v220_v24, %v204_v23  ;;  %v203_v31 = vld [vmem:[%s1396_s15 + $0x40] sm:$0xff]  ;;  %v205_v33 = vld [vmem:[%s1396_s15 + $0x50] sm:$0xff] }
  0x5e   : > { %1054 = vmatprep.subr.bf16.mxu1 %v1053_v20  ;;  %v222_v27 = vld [vmem:[%s1402_s27 + $0x58] sm:$0xff]  ;;  %v219_v32 = vld [vmem:[%s1402_s27 + $0x40] sm:$0xff]  ;;  %v221_v34 = vld [vmem:[%s1402_s27 + $0x50] sm:$0xff] }
  0x5f   : > { %v1061_v30 = vpack.c.bf16 %v222_v27, %v206_v26  ;;  %v208_v35 = vld [vmem:[%s1396_s15 + $0x68] sm:$0xff]  ;;  %v1059_v37 = vpack.c.bf16 %v219_v32, %v203_v31  ;;  %v210_v38 = vld [vmem:[%s1396_s15 + $0x78] sm:$0xff]  ;;  %v1063_v40 = vpack.c.bf16 %v221_v34, %v205_v33  ;;  %v207_v43 = vld [vmem:[%s1396_s15 + $0x60] sm:$0xff] }
  0x60   : > { %v224_v36 = vld [vmem:[%s1402_s27 + $0x68] sm:$0xff]  ;;  %v226_v39 = vld [vmem:[%s1402_s27 + $0x78] sm:$0xff]  ;;  %v223_v44 = vld [vmem:[%s1402_s27 + $0x60] sm:$0xff] }
  0x61   : > { %v1065_v41 = vpack.c.bf16 %v224_v36, %v208_v35  ;;  %v1069_v42 = vpack.c.bf16 %v226_v39, %v210_v38  ;;  %v209_v45 = vld [vmem:[%s1396_s15 + $0x70] sm:$0xff]  ;;  %v1067_v47 = vpack.c.bf16 %v223_v44, %v207_v43 }
  0x62   : > { %v225_v46 = vld [vmem:[%s1402_s27 + $0x70] sm:$0xff] }
  0x63   : > { %358 = vmatmul.mubr.f32.vlgmr.msra.gmra.mrb[0].mxu0 %v195_v3  ;;  %v1071_v48 = vpack.c.bf16 %v225_v46, %v209_v45 }
  0x64   : > { %433 = vmatmul.mubr.f32.vlgmr.msra.gmra.mrb[0].mxu1 %v197_v10  ;;  %1052 = vmatpush1.bf16.xpose.msra.mxu0 %v1051_v25 }
  0x65   : > { %362 = vmatprep.mubr.f32.mxu0 %v212_v2  ;;  %1056 = vmatpush1.bf16.xpose.msra.mxu1 %v1055_v28 }
  0x66   : > { %437 = vmatprep.mubr.f32.mxu1 %v214_v7  ;;  %1058 = vmatprep.subr.bf16.mxu0 %v1057_v29 }
  0x67   : > { %363 = vmatmul.mubr.f32.gmra.mrb[2].mxu0 %v211_v5  ;;  %1062 = vmatprep.subr.bf16.mxu1 %v1061_v30 }
  0x68   : > { %438 = vmatmul.mubr.f32.gmra.mrb[2].mxu1 %v213_v11  ;;  %507 = vmatprep.mubr.f32.mxu0 %v200_v12 }
  0x69   : > { %582 = vmatprep.mubr.f32.mxu1 %v202_v16 }
  0x6b   : > { %508 = vmatmul.mubr.f32.vlgmr.msra.gmra.mrb[4].mxu0 %v199_v18 }
  0x6c   : > { %1060 = vmatpush1.bf16.xpose.msra.mxu0 %v1059_v37  ;;  %583 = vmatmul.mubr.f32.vlgmr.msra.gmra.mrb[4].mxu1 %v201_v21 }
  0x6d   : > { %512 = vmatprep.mubr.f32.mxu0 %v216_v14  ;;  %1064 = vmatpush1.bf16.xpose.msra.mxu1 %v1063_v40 }
  0x6e   : > { %587 = vmatprep.mubr.f32.mxu1 %v218_v17  ;;  %1066 = vmatprep.subr.bf16.mxu0 %v1065_v41 }
  0x6f   : > { %513 = vmatmul.mubr.f32.gmra.mrb[6].mxu0 %v215_v19  ;;  %1070 = vmatprep.subr.bf16.mxu1 %v1069_v42 }
  0x70   : > { %588 = vmatmul.mubr.f32.gmra.mrb[6].mxu1 %v217_v22  ;;  %657 = vmatprep.mubr.f32.mxu0 %v204_v23  ;;  %v291_v23 = vld [vmem:[#allocation3] sm:$0xff] }
  0x71   : > { %732 = vmatprep.mubr.f32.mxu1 %v206_v26 }
  0x73   : > { %658 = vmatmul.mubr.f32.vlgmr.msra.gmra.mrb[8].mxu0 %v203_v31  ;;  %v292_v31 = vld [vmem:[#allocation3 + $0x8] sm:$0xff] }
  0x74   : > { %1068 = vmatpush1.bf16.xpose.msra.mxu0 %v1067_v47  ;;  %733 = vmatmul.mubr.f32.vlgmr.msra.gmra.mrb[8].mxu1 %v205_v33 }
  0x75   : > { %662 = vmatprep.mubr.f32.mxu0 %v220_v24  ;;  %1072 = vmatpush1.bf16.xpose.msra.mxu1 %v1071_v48 }
  0x76   : > { %737 = vmatprep.mubr.f32.mxu1 %v222_v27 }
  0x77   : > { %663 = vmatmul.mubr.f32.gmra.mrb[10].mxu0 %v219_v32 }
  0x78   : > { %738 = vmatmul.mubr.f32.gmra.mrb[10].mxu1 %v221_v34  ;;  %807 = vmatprep.mubr.f32.mxu0 %v208_v35 }
  0x79   : > { %882 = vmatprep.mubr.f32.mxu1 %v210_v38 }
  0x7b   : > { %808 = vmatmul.mubr.f32.vlgmr.msra.gmra.mrb[12].mxu0 %v207_v43 }
  0x7c   : > { %883 = vmatmul.mubr.f32.vlgmr.msra.gmra.mrb[12].mxu1 %v209_v45  ;;  %812 = vmatprep.mubr.f32.mxu0 %v224_v36 }
  0x7d   : > { %887 = vmatprep.mubr.f32.mxu1 %v226_v39 }
  0x7f   : > { %813 = vmatmul.mubr.f32.gmra.mrb[14].mxu0 %v223_v44 }
  0x80   : > { %888 = vmatmul.mubr.f32.gmra.mrb[14].mxu1 %v225_v46 }
 0x136   : > { %v359_v49 = vpop.f32.mrb[0].mxu0 }
 0x137   : > { %v361_v50 = vpop.f32.mrb[1].mxu0  ;;  %v434_v51 = vpop.f32.mrb[0].mxu1 }
 0x138   : > { %v435_v52 = vadd.f32 %v434_v51, %v359_v49  ;;  %v436_v53 = vpop.f32.mrb[1].mxu1 }
 0x13a   : > { %v364_v54 = vpop.f32.mrb[2].mxu0 }
 0x13b   : > { %v366_v55 = vpop.f32.mrb[3].mxu0  ;;  %v439_v56 = vpop.f32.mrb[2].mxu1 }
 0x13c   : > { %v440_v57 = vadd.f32 %v439_v56, %v364_v54  ;;  %v441_v58 = vpop.f32.mrb[3].mxu1 }
 0x13e   : > { %v509_v59 = vpop.f32.mrb[4].mxu0 }
 0x13f   : > { %v510_v60 = vadd.f32 %v509_v59, %v435_v52  ;;  %v511_v61 = vpop.f32.mrb[5].mxu0  ;;  %v584_v62 = vpop.f32.mrb[4].mxu1 }
 0x140   : > { %v586_v63 = vpop.f32.mrb[5].mxu1 }
 0x141   : > { %v585_v0 = vadd.f32 %v584_v62, %v510_v60 }
 0x142   : > { %v514_v1 = vpop.f32.mrb[6].mxu0 }
 0x143   : > { %v515_v2 = vadd.f32 %v514_v1, %v440_v57  ;;  %v516_v3 = vpop.f32.mrb[7].mxu0  ;;  %v589_v4 = vpop.f32.mrb[6].mxu1 }
 0x144   : > { %v591_v5 = vpop.f32.mrb[7].mxu1 }
 0x145   : > { %v590_v6 = vadd.f32 %v589_v4, %v515_v2 }
 0x146   : > { %v659_v7 = vpop.f32.mrb[8].mxu0 }
 0x147   : > { %v660_v8 = vadd.f32 %v659_v7, %v585_v0  ;;  %v661_v9 = vpop.f32.mrb[9].mxu0  ;;  %v734_v10 = vpop.f32.mrb[8].mxu1 }
 0x148   : > { %v736_v11 = vpop.f32.mrb[9].mxu1 }
 0x149   : > { %v735_v12 = vadd.f32 %v734_v10, %v660_v8 }
 0x14a   : > { %v664_v13 = vpop.f32.mrb[10].mxu0 }
 0x14b   : > { %v665_v14 = vadd.f32 %v664_v13, %v590_v6  ;;  %v666_v15 = vpop.f32.mrb[11].mxu0  ;;  %v739_v16 = vpop.f32.mrb[10].mxu1 }
 0x14c   : > { %v741_v17 = vpop.f32.mrb[11].mxu1 }
 0x14d   : > { %v740_v18 = vadd.f32 %v739_v16, %v665_v14 }
 0x14e   : > { %v809_v19 = vpop.f32.mrb[12].mxu0 }
 0x14f   : > { %v810_v20 = vadd.f32 %v809_v19, %v735_v12  ;;  %v811_v21 = vpop.f32.mrb[13].mxu0  ;;  %v884_v22 = vpop.f32.mrb[12].mxu1 }
 0x150   : > { %v886_v24 = vpop.f32.mrb[13].mxu1 }
 0x151   : > { %v885_v25 = vadd.f32 %v884_v22, %v810_v20 }
 0x152   : > { %v814_v26 = vpop.f32.mrb[14].mxu0 }
 0x153   : > { %v893_v27 = vadd.f32 %v885_v25, %v291_v23  ;;  %v815_v28 = vadd.f32 %v814_v26, %v740_v18  ;;  %v816_v29 = vpop.f32.mrb[15].mxu0  ;;  %v889_v30 = vpop.f32.mrb[14].mxu1  ;;  %901 = sbr.rel (%p1034_p8) target bundleno = 953 (0x3b9), region = 44 }
 0x154   : > { %v891_v32 = vpop.f32.mrb[15].mxu1 }
 0x155   : > { %896 = vst.msk [vmem:[#allocation3] sm:$0xff] %vm895_vm1, %v893_v27  ;;  %v890_v33 = vadd.f32 %v889_v30, %v815_v28 }
 0x157   : > { %v894_v34 = vadd.f32 %v890_v33, %v292_v31 }
 0x159   : > { %897 = vst.msk [vmem:[#allocation3 + $0x8] sm:$0xff] %vm895_vm1, %v894_v34 }
 0x15c   : > { %v902_v36 = vld [vmem:[#allocation3] sm:$0xff] }
 0x15d   : > { %v904_v38 = vmul.f32 %v902_v36, %v902_v36 }
 0x15f   : > { %v906_v39 = vsel %vm905_vm2, %v904_v38, 0.0 }
 0x160   : > { %v903_v35 = vld [vmem:[#allocation3 + $0x8] sm:$0xff]  ;;  %907 = vadd.xlane.f32.xlu1 %v906_v39 }
 0x161   : > { %v911_v37 = vmul.f32 %v903_v35, %v903_v35 }
 0x163   : > { %913 = vrot.lane.b32.xlu0 %v911_v37, %s1251_s18 }
 0x1d5   : > { %v914_v40 = vpop.permute.xlu0 %913 }
 0x1d6   : > { %v916_v41 = vsel %vm905_vm2, %v914_v40, 0.0 }
 0x1d7   : > { %917 = vadd.xlane.f32.xlu0 %v916_v41 }
 0x1ed   : > { %v908_v45 = vpop.xlane.xlu1 %907 }
 0x264   : > { %v918_v42 = vpop.xlane.xlu0 %917 }
 0x265   : > { %1128 = vrsqrt.f32 %v918_v42 }
 0x266   : > { %1130 = vrsqrt.f32 %v908_v45 }
 0x26f   : > { %v1129_v43 = vpop.eup %1128 }
 0x270   : > { %v920_v44 = vmul.f32 %v1129_v43, %v903_v35  ;;  %v1131_v46 = vpop.eup %1130 }
 0x271   : > { %v910_v47 = vmul.f32 %v1131_v46, %v902_v36 }
 0x272   : > { %922 = vrot.lane.b32.xlu1 %v920_v44, %s1251_s18 }
 0x2e4   : > { %v923_v48 = vpop.permute.xlu1 %922 }
 0x2e5   : > { %v925_v49 = vsub.f32 %v910_v47, %v923_v48 }
 0x2e7   : > { %v926_v50 = vmul.f32 %v925_v49, %v925_v49 }
 0x2e9   : > { %v927_v51 = vsel %vm905_vm2, %v926_v50, 0.0 }
 0x2ea   : > { %928 = vadd.xlane.f32.xlu1 %v927_v51 }
 0x377   : > { %v929_v52 = vpop.xlane.xlu1 %928 }
 0x378   : > { %v930_v53 = vrot.slane %v929_v52, 4 }
 0x37a   : > { %v931_v54 = vadd.f32 %v930_v53, %v929_v52 }
 0x37c   : > { %v932_v55 = vrot.slane %v931_v54, 2 }
 0x37e   : > { %v933_v56 = vadd.f32 %v932_v55, %v931_v54 }
 0x380   : > { %v934_v57 = vrot.slane %v933_v56, 1 }
 0x382   : > { %v935_v58 = vadd.f32 %v934_v57, %v933_v56 }
 0x384   : > { %1073 = vpush %v935_v58 }
 0x3b5   : > { %s1074_s16 = spop %1073 }
 0x3b6   : > { %s939_s23 = smul.f32 0.125, %s1074_s16 }
 0x3b8   : > { %941 = sst [smem:[#allocation9]] %s939_s23 }
 0x3b9 PF: > { %p1091_p5 = scmp.eq.s32.totalorder %s1287_s13, 1  ;;  %s1192_s30 = scalar_lea.hbm %s1473_s2, 16 }
 0x3ba   : > { %p1193_p1 = scmp.ne.s32.totalorder %s1473_s2, %s1192_s30  ;;  %p1198_p0 = scmp.lt.u32.totalorder %s1192_s30, %s1473_s2 }
 0x3bc   : > { %p1194_p2 = pnand %p1193_p1, %p1091_p5 }
 0x3be   : > { %p1195_p3 = pneg %p1194_p2 }
 0x3c0   : > { %p1200_p4 = pnand %p1198_p0, %p1195_p3 }
 0x3c2   : > { %1203 = shalt.err (!%p1200_p4)
}
 0x3c3   : > { %s1252_s21 = smov [#allocation9]  }
 0x3c4   : > { %1080 = dma.smem_to_hbm (%p1091_p5), %s1252_s21, 16, %s1473_s2, [#allocation6]  }
 0x3c5   : > { %1229 = dma.done.wait (%p1091_p5), [#allocation6], 16  }
 0x3c6   : > { %1231 = vsyncadd (%p1091_p5), [#allocation6], 4294967280 }
 0x3c7   : > { %955 = sfence }
 0x3c8 PF: > { %p16_p9 = scmp.ge.s32.totalorder %s1290_s14, 4   ;;  %s1482_s9 = smov %s1238_s10 }
 0x3c9   : > { %s1483_s10 = smov %s1242_s11  ;;  %s1484_s11 = smov %s1300_s17 }
 0x3ca   : > { %s1485_s12 = smov %s1290_s14  ;;  %18 = sbr.rel (!%p16_p9) target bundleno = 6 (0x6), region = 87 }
 0x3d1   :  { %961 = vsyncpa [#allocation5], 1 }
 0x3d2   :  { %963 = vsyncpa [#allocation5 + $0x1], 1 }
 0x3d3   :  { %964 = vsyncpa [#allocation8], 1 }
 0x3d4   :  { %966 = vsyncpa [#allocation8 + $0x1], 1 }
 0x3d5   :  { %967 = vsyncpa [#allocation6], 1 }
 0x3d6   :  { %969 = vsyncpa [#allocation6 + $0x1], 1 }

</bundles_post_ra>
